<compile_context>
chip_gen: v6e
topology: v6e:2x2x1
jax: 0.10.0
libtpu: 0.0.40
codegen_flags: <defaults>
</compile_context>

<pallas_src>
import jax
import jax.numpy as jnp
from jax.experimental import pallas as pl
from jax.experimental.pallas import tpu as pltpu


_LANE = 128          # lane tile / MXU tile
_MAX_TK = 512        # vocab rows streamed per grid step


def _round_up(x: int, m: int) -> int:
    return ((x + m - 1) // m) * m


def _default_tm() -> int:
    """Ids per grid step: match the MXU M dimension per generation."""
    try:
        kind = jax.devices()[0].device_kind.lower()
    except Exception:  # pragma: no cover - defensive
        return 128
    if ("v6" in kind) or ("v7" in kind) or ("trillium" in kind):
        return 256   # 256x256 MXU on v6e / v7x
    return 128       # 128x128 MXU on v5e and older


def _embed_onehot_kernel(ids_ref, table_ref, out_ref, acc_ref):
    """Exact embedding gather as a vocab-tiled one-hot MXU matmul.

    ids_ref:   (TM, 1)       int32 VMEM block (ids for this row-block)
    table_ref: (TK, E_pad)   streamed table block for vocab rows [k*TK, (k+1)*TK)
    out_ref:   (TM, E_pad)   output block (written once, at the last vocab step)
    acc_ref:   (TM, E_pad)   f32 VMEM scratch accumulator
    """
    k = pl.program_id(1)

    @pl.when(k == 0)
    def _():
        acc_ref[...] = jnp.zeros_like(acc_ref)

    ids = ids_ref[...]                                        # (TM, 1)
    tm = ids.shape[0]
    tk = table_ref.shape[0]
    base = k * tk
    col = jax.lax.broadcasted_iota(jnp.int32, (tm, tk), 1) + base
    onehot = (col == ids).astype(table_ref.dtype)             # (TM, TK), exact
    acc_ref[...] += jnp.dot(onehot, table_ref[...],
                            preferred_element_type=jnp.float32)

    @pl.when(k == pl.num_programs(1) - 1)
    def _():
        out_ref[...] = acc_ref[...].astype(out_ref.dtype)


def embedding_lookup_padded(table_p: jax.Array, ids: jax.Array, *, e: int,
                            tm: int, tk: int,
                            min_pallas_ids: int = 1024) -> jax.Array:
    """nn.Embedding(table)[ids] where `table_p` is the pre-padded (V_pad, E_pad)
    table (padded rows are zero and never selected by in-range ids).

    Returns ids.shape + (e,).
    """
    orig_shape = ids.shape
    ids_flat = ids.reshape(-1).astype(jnp.int32)
    n = ids_flat.shape[0]
    v_pad, e_pad = table_p.shape
    assert v_pad % tk == 0 and e_pad % _LANE == 0

    if n < min_pallas_ids:
        # Small-problem fallback: a Pallas launch is pure overhead here.
        return jnp.take(table_p, ids_flat, axis=0)[:, :e].reshape(orig_shape + (e,))

    n_pad = _round_up(max(n, 1), tm)
    ids_p = jnp.zeros((n_pad, 1), jnp.int32).at[:n, 0].set(ids_flat)

    out = pl.pallas_call(
        _embed_onehot_kernel,
        out_shape=jax.ShapeDtypeStruct((n_pad, e_pad), table_p.dtype),
        grid_spec=pltpu.PrefetchScalarGridSpec(
            num_scalar_prefetch=0,
            grid=(n_pad // tm, v_pad // tk),           # vocab (reduction) last
            in_specs=[
                # TM ids per row-block; lane dim 1 == full array dim -> legal.
                pl.BlockSpec((tm, 1), lambda i, k: (i, 0)),
                # Streamed (TK, E_pad) vocab slab; VMEM is bounded regardless
                # of total vocab size.
                pl.BlockSpec((tk, e_pad), lambda i, k: (k, 0)),
            ],
            out_specs=pl.BlockSpec((tm, e_pad), lambda i, k: (i, 0)),
            scratch_shapes=[pltpu.VMEM((tm, e_pad), jnp.float32)],
        ),
        compiler_params=pltpu.CompilerParams(
            dimension_semantics=("parallel", "arbitrary"),
        ),
    )(ids_p, table_p)

    return out[:n, :e].reshape(orig_shape + (e,))


class WordRepParams:
    """Parameters + one-time padded/packed table (hoisted out of forward)."""

    def __init__(self, key, vocab_size, embed_size, entity_num,
                 *, tm=None, tk=None):
        k1, k2 = jax.random.split(key)
        embed_w = jax.random.normal(k1, (vocab_size, embed_size), jnp.float32) * 0.02
        embed_w = embed_w.at[0].set(0.0)            # padding_idx=0 => zero row
        graph_w = jax.random.normal(k2, (entity_num, embed_size), jnp.float32) * 0.02

        self.embed_weight = embed_w
        self.graph_weight = graph_w
        self.vocab_size = vocab_size
        self.embed_size = embed_size

        self.tm = int(tm) if tm is not None else _default_tm()
        v_total = vocab_size + entity_num
        self.tk = int(tk) if tk is not None else min(_round_up(v_total, _LANE), _MAX_TK)

        v_pad = _round_up(v_total, self.tk)
        e_pad = _round_up(embed_size, _LANE)
        # Pack word + graph tables along the vocab axis and pad ONCE:
        #   rows [0, vocab_size)            -> word embeddings
        #   rows [vocab_size, v_total)      -> graph embeddings
        #   rows [v_total, v_pad) / cols [embed_size, e_pad) -> zero padding
        packed = jnp.zeros((v_pad, e_pad), jnp.float32)
        packed = packed.at[:vocab_size, :embed_size].set(embed_w)
        packed = packed.at[vocab_size:v_total, :embed_size].set(graph_w)
        self.packed_table = packed


def word_rep_forward(params: WordRepParams, x: jax.Array, node_ids=None,
                     *, min_pallas_ids: int = 1024):
    """Mirrors WordRep.forward(x, node_ids)."""
    e = params.embed_size
    if node_ids is None:
        # embed_drop: identity (eval mode).
        return embedding_lookup_padded(
            params.packed_table, x, e=e, tm=params.tm, tk=params.tk,
            min_pallas_ids=min_pallas_ids)

    # Both nn.Embedding lookups share one fused pallas_call: the graph table is
    # packed after the word table, so node ids are offset by the word vocab.
    n_x = int(x.size)
    ids_all = jnp.concatenate([
        x.reshape(-1).astype(jnp.int32),
        node_ids.reshape(-1).astype(jnp.int32) + params.vocab_size,
    ])
    out_all = embedding_lookup_padded(
        params.packed_table, ids_all, e=e, tm=params.tm, tk=params.tk,
        min_pallas_ids=min_pallas_ids)
    x_embed = out_all[:n_x].reshape(x.shape + (e,))      # embed_drop: identity
    node_embed = out_all[n_x:].reshape(node_ids.shape + (e,))
    return x_embed, node_embed


if __name__ == "__main__":
    key = jax.random.PRNGKey(0)
    k_params, k_x, k_nodes, k_p2, k_x2, k_n2 = jax.random.split(key, 6)

    # --- Test 1: small shapes consistent with the module -------------------
    vocab_size = 52       # len(dicts['w2ind']) + 2
    embed_size = 128      # args.embed_size
    entity_num = 10       # args.entity_num
    batch, seq = 2, 8
    n_nodes = 6

    params = WordRepParams(k_params, vocab_size, embed_size, entity_num)
    x = jax.random.randint(k_x, (batch, seq), 0, vocab_size, dtype=jnp.int32)
    node_ids = jax.random.randint(k_nodes, (n_nodes,), 0, entity_num, dtype=jnp.int32)

    # Force the Pallas kernel path (min_pallas_ids=0) so it runs on this demo.
    x_embed, node_embed = word_rep_forward(params, x, node_ids, min_pallas_ids=0)
    x_embed = jax.block_until_ready(x_embed)
    node_embed = jax.block_until_ready(node_embed)

    ref_x = jnp.take(params.embed_weight, x, axis=0)
    ref_nodes = jnp.take(params.graph_weight, node_ids, axis=0)
    assert x_embed.shape == (batch, seq, embed_size)
    assert node_embed.shape == (n_nodes, embed_size)
    assert jnp.allclose(x_embed, ref_x)
    assert jnp.allclose(node_embed, ref_nodes)

    # Default small-problem fallback path must agree with the kernel path.
    x_fb, n_fb = word_rep_forward(params, x, node_ids)
    assert jnp.allclose(jax.block_until_ready(x_fb), ref_x)
    assert jnp.allclose(jax.block_until_ready(n_fb), ref_nodes)

    # node_ids=None path (kernel forced).
    x_only = jax.block_until_ready(word_rep_forward(params, x, None, min_pallas_ids=0))
    assert jnp.allclose(x_only, ref_x)

    # --- Test 2: exercise multi-block ids + multi-step vocab accumulation ---
    vocab2, embed2, ent2 = 600, 64, 40          # v_pad=1024 -> 2 vocab steps
    b2, s2, nn2 = 3, 90, 50                     # 320 ids -> >1 id block
    params2 = WordRepParams(k_p2, vocab2, embed2, ent2)
    x2 = jax.random.randint(k_x2, (b2, s2), 0, vocab2, dtype=jnp.int32)
    node2 = jax.random.randint(k_n2, (nn2,), 0, ent2, dtype=jnp.int32)
    xe2, ne2 = word_rep_forward(params2, x2, node2, min_pallas_ids=0)
    xe2 = jax.block_until_ready(xe2)
    ne2 = jax.block_until_ready(ne2)
    assert jnp.allclose(xe2, jnp.take(params2.embed_weight, x2, axis=0))
    assert jnp.allclose(ne2, jnp.take(params2.graph_weight, node2, axis=0))

    print("KERNEL_OK")
</pallas_src>

<mosaic_0001>
module attributes {stable_mosaic.version = 11 : i64} {
  func.func @_embed_onehot_kernel(%arg0: i32, %arg1: i32, %arg2: memref<128x1xi32, #tpu.memory_space<vmem>>, %arg3: memref<128x128xf32, #tpu.memory_space<vmem>>, %arg4: memref<128x128xf32, #tpu.memory_space<vmem>>, %arg5: memref<128x128xf32, #tpu.memory_space<vmem>>) attributes {dimension_semantics = [#tpu.dimension_semantics<parallel>, #tpu.dimension_semantics<arbitrary>], iteration_bounds = array<i64: 1, 1>, scalar_prefetch = 0 : i64, scratch_operands = 1 : i64, tpu.core_type = #tpu.core_type<tc>, window_params = [{transform_indices = @transform_0, window_bounds = array<i64: 128, 1>}, {transform_indices = @transform_1, window_bounds = array<i64: 128, 128>}, {transform_indices = @transform_2, window_bounds = array<i64: 128, 128>}]} {
    %c0_i32 = arith.constant 0 : i32
    %0 = arith.cmpi eq, %arg1, %c0_i32 : i32
    %1 = arith.extui %0 : i1 to i32
    %c0_i32_0 = arith.constant 0 : i32
    %2 = arith.cmpi ne, %1, %c0_i32_0 : i32
    scf.if %2 {
      %cst_10 = arith.constant 0.000000e+00 : f32
      %20 = vector.broadcast %cst_10 : f32 to vector<128x128xf32>
      %c0_11 = arith.constant 0 : index
      %c0_12 = arith.constant 0 : index
      %21 = vector.load %arg5[%c0_11, %c0_12] : memref<128x128xf32, #tpu.memory_space<vmem>>, vector<128x128xf32>
      tpu.vector_store %arg5[%c0_11, %c0_12], %20 {strides = array<i32>} : memref<128x128xf32, #tpu.memory_space<vmem>>, vector<128x128xf32>,
    } else {
    }
    %c0 = arith.constant 0 : index
    %c0_1 = arith.constant 0 : index
    %3 = vector.load %arg2[%c0, %c0_1] : memref<128x1xi32, #tpu.memory_space<vmem>>, vector<128x1xi32>
    %c128_i32 = arith.constant 128 : i32
    %4 = arith.muli %arg1, %c128_i32 : i32
    %5 = tpu.iota {dimensions = array<i32: 1>} : vector<128x128xi32>
    %6 = vector.broadcast %4 : i32 to vector<128x128xi32>
    %7 = arith.addi %5, %6 : vector<128x128xi32>
    %8 = vector.broadcast %3 : vector<128x1xi32> to vector<128x128xi32>
    %9 = arith.cmpi eq, %7, %8 : vector<128x128xi32>
    %10 = arith.extui %9 : vector<128x128xi1> to vector<128x128xi32>
    %11 = arith.sitofp %10 : vector<128x128xi32> to vector<128x128xf32>
    %c0_2 = arith.constant 0 : index
    %c0_3 = arith.constant 0 : index
    %12 = vector.load %arg5[%c0_2, %c0_3] : memref<128x128xf32, #tpu.memory_space<vmem>>, vector<128x128xf32>
    %c0_4 = arith.constant 0 : index
    %c0_5 = arith.constant 0 : index
    %13 = vector.load %arg3[%c0_4, %c0_5] : memref<128x128xf32, #tpu.memory_space<vmem>>, vector<128x128xf32>
    %cst = arith.constant dense<0.000000e+00> : vector<128x128xf32>
    %14 = tpu.matmul %11, %13, %cst {dimension_numbers = #tpu.dot_dimension_numbers<[1], [0], [0], [1], [0, 0, 1, 1], [], []>} : vector<128x128xf32>, vector<128x128xf32>, vector<128x128xf32> -> vector<128x128xf32>
    %15 = arith.addf %12, %14 : vector<128x128xf32>
    %c0_6 = arith.constant 0 : index
    %c0_7 = arith.constant 0 : index
    %16 = vector.load %arg5[%c0_6, %c0_7] : memref<128x128xf32, #tpu.memory_space<vmem>>, vector<128x128xf32>
    tpu.vector_store %arg5[%c0_6, %c0_7], %15 {strides = array<i32>} : memref<128x128xf32, #tpu.memory_space<vmem>>, vector<128x128xf32>,
    %c0_i32_8 = arith.constant 0 : i32
    %17 = arith.cmpi eq, %arg1, %c0_i32_8 : i32
    %18 = arith.extui %17 : i1 to i32
    %c0_i32_9 = arith.constant 0 : i32
    %19 = arith.cmpi ne, %18, %c0_i32_9 : i32
    scf.if %19 {
      %c0_10 = arith.constant 0 : index
      %c0_11 = arith.constant 0 : index
      %20 = vector.load %arg5[%c0_10, %c0_11] : memref<128x128xf32, #tpu.memory_space<vmem>>, vector<128x128xf32>
      %c0_12 = arith.constant 0 : index
      %c0_13 = arith.constant 0 : index
      %21 = vector.load %arg4[%c0_12, %c0_13] : memref<128x128xf32, #tpu.memory_space<vmem>>, vector<128x128xf32>
      tpu.vector_store %arg4[%c0_12, %c0_13], %20 {strides = array<i32>} : memref<128x128xf32, #tpu.memory_space<vmem>>, vector<128x128xf32>,
    } else {
    }
    return
  }
  func.func @transform_0(%arg0: i32, %arg1: i32) -> (i32, i32) {
    %c0_i32 = arith.constant 0 : i32
    %c0_i32_0 = arith.constant 0 : i32
    return %arg0, %c0_i32 : i32, i32
  }
  func.func @transform_1(%arg0: i32, %arg1: i32) -> (i32, i32) {
    %c0_i32 = arith.constant 0 : i32
    %c0_i32_0 = arith.constant 0 : i32
    return %arg1, %c0_i32 : i32, i32
  }
  func.func @transform_2(%arg0: i32, %arg1: i32) -> (i32, i32) {
    %c0_i32 = arith.constant 0 : i32
    %c0_i32_0 = arith.constant 0 : i32
    return %arg0, %c0_i32 : i32, i32
  }
}

</mosaic_0001>

<bundles_post_ra>
// kernel: tpu_custom_call.1
= control target key start
LH: loop header
LB: loop body
LE: loop exit
PB: predicated region body
PF: predicated region fallthrough
CT: control target
= control target key end

     0   :  { %v590_v2 = vmov 0   ;;  %s709_s0 = inlined_call_operand.vmem [shape: s32[128,1], index: 0, kind: input, shape index: {}]   ;;  %s710_s1 = inlined_call_operand.vmem [shape: f32[128,128], index: 1, kind: input, shape index: {}]   ;;  %s711_s2 = inlined_call_operand.hbm [shape: f32[128,128], index: 2, kind: output, shape index: {}]  }
   0x1   :  { %v33_v0 = vld [vmem:[%s709_s0 + $0x8] sm:$0xff]  ;;  %v32_v1 = vld [vmem:[%s709_s0] sm:$0xff]  ;;  %567 = vset.pattern.permute.xlu1 %v590_v2  ;;  %566 = vset.pattern.permute.xlu0 %v590_v2  ;;  %v180_v5 = vld [vmem:[%s710_s1 + $0x78] sm:$0xff] }
   0x2   :  { %57 = vperm.xlu1 %567, %v33_v0   ;;  %54 = vperm.xlu0 %566, %v32_v1   ;;  %v41_v3 = vld [vmem:[%s709_s0 + $0x48] sm:$0xff]  ;;  %v40_v4 = vld [vmem:[%s709_s0 + $0x40] sm:$0xff]  ;;  %v179_v6 = vld [vmem:[%s710_s1 + $0x70] sm:$0xff] }
   0x3   :  { %v42_v7 = vld [vmem:[%s709_s0 + $0x50] sm:$0xff]  ;;  %473 = vmatprep.subr.mxu0 %v180_v5  ;;  %529 = vmatprep.subr.mxu1 %v180_v5  ;;  %v178_v9 = vld [vmem:[%s710_s1 + $0x68] sm:$0xff] }
   0x4   :  { %v34_v8 = vld [vmem:[%s709_s0 + $0x10] sm:$0xff]  ;;  %474 = vmatpush3.msra.mxu0 %v180_v5  ;;  %545 = vmatpush3.msra.mxu1 %v180_v5 }
   0x5   :  { %475 = vmatprep.subr.mxu0 %v179_v6  ;;  %530 = vmatprep.subr.mxu1 %v179_v6 }
   0x6   :  { %81 = vperm.xlu1 %567, %v41_v3   ;;  %78 = vperm.xlu0 %566, %v40_v4  }
   0xa   :  { %84 = vperm.xlu1 %567, %v42_v7   ;;  %60 = vperm.xlu0 %566, %v34_v8  }
   0xb   :  { %7 = vsyncpa [#allocation4], 0  ;;  %v43_v10 = vld [vmem:[%s709_s0 + $0x58] sm:$0xff]  ;;  %476 = vmatpush3.msra.mxu0 %v179_v6  ;;  %546 = vmatpush3.msra.mxu1 %v179_v6  ;;  %v177_v12 = vld [vmem:[%s710_s1 + $0x60] sm:$0xff]  ;;  %v49_v33 = vlaneseq  ;;  %v591_v37 = vmov 1.0  }
   0xc   :  { %v35_v11 = vld [vmem:[%s709_s0 + $0x18] sm:$0xff]  ;;  %477 = vmatprep.subr.mxu0 %v178_v9  ;;  %531 = vmatprep.subr.mxu1 %v178_v9  ;;  %v44_v14 = vld [vmem:[%s709_s0 + $0x60] sm:$0xff]  ;;  %v175_v16 = vld [vmem:[%s710_s1 + $0x50] sm:$0xff] }
   0xd   :  { %478 = vmatpush3.msra.mxu0 %v178_v9  ;;  %547 = vmatpush3.msra.mxu1 %v178_v9  ;;  %v176_v13 = vld [vmem:[%s710_s1 + $0x58] sm:$0xff]  ;;  %v36_v15 = vld [vmem:[%s709_s0 + $0x20] sm:$0xff]  ;;  %v45_v17 = vld [vmem:[%s709_s0 + $0x68] sm:$0xff]  ;;  %v50_v34 = vand.u32 127, %v49_v33 }
   0xe   :  { %87 = vperm.xlu1 %567, %v43_v10   ;;  %63 = vperm.xlu0 %566, %v35_v11   ;;  %v37_v18 = vld [vmem:[%s709_s0 + $0x28] sm:$0xff]  ;;  %v173_v20 = vld [vmem:[%s710_s1 + $0x40] sm:$0xff]  ;;  %v46_v21 = vld [vmem:[%s709_s0 + $0x70] sm:$0xff] }
   0xf   :  { %479 = vmatprep.subr.mxu0 %v177_v12  ;;  %532 = vmatprep.subr.mxu1 %v177_v12  ;;  %v174_v19 = vld [vmem:[%s710_s1 + $0x48] sm:$0xff]  ;;  %v38_v22 = vld [vmem:[%s709_s0 + $0x30] sm:$0xff]  ;;  %v172_v23 = vld [vmem:[%s710_s1 + $0x38] sm:$0xff] }
  0x10   :  { %480 = vmatpush3.msra.mxu0 %v177_v12  ;;  %548 = vmatpush3.msra.mxu1 %v177_v12  ;;  %v47_v24 = vld [vmem:[%s709_s0 + $0x78] sm:$0xff]  ;;  %v171_v26 = vld [vmem:[%s710_s1 + $0x30] sm:$0xff]  ;;  %v170_v27 = vld [vmem:[%s710_s1 + $0x28] sm:$0xff] }
  0x11   :  { %481 = vmatprep.subr.mxu0 %v176_v13  ;;  %533 = vmatprep.subr.mxu1 %v176_v13  ;;  %v39_v25 = vld [vmem:[%s709_s0 + $0x38] sm:$0xff]  ;;  %v169_v28 = vld [vmem:[%s710_s1 + $0x20] sm:$0xff]  ;;  %v167_v30 = vld [vmem:[%s710_s1 + $0x10] sm:$0xff] }
  0x12   :  { %90 = vperm.xlu1 %567, %v44_v14   ;;  %66 = vperm.xlu0 %566, %v36_v15   ;;  %v168_v29 = vld [vmem:[%s710_s1 + $0x18] sm:$0xff]  ;;  %v166_v31 = vld [vmem:[%s710_s1 + $0x8] sm:$0xff]  ;;  %v165_v32 = vld [vmem:[%s710_s1] sm:$0xff]  ;;  %s592_s1 = smov [#allocation3]  }
  0x13   :  { %482 = vmatpush3.msra.mxu0 %v176_v13  ;;  %549 = vmatpush3.msra.mxu1 %v176_v13  ;;  %s398_s16 = sshll.u32 %s592_s1, 4  ;;  %s399_s16 = int_to_ptr.vmem [resolvable:$true] %s398_s16 }
  0x14   :  { %483 = vmatprep.subr.mxu0 %v175_v16  ;;  %534 = vmatprep.subr.mxu1 %v175_v16  ;;  %s568_s17 = scalar_lea.vmem %s399_s16, 2048  ;;  %p573_p1 = scmp.lt.s32.totalorder %s399_s16, %s399_s16 }
  0x15   :  { %484 = vmatpush3.msra.mxu0 %v175_v16  ;;  %550 = vmatpush3.msra.mxu1 %v175_v16  ;;  %p569_p0 = scmp.ne.s32.totalorder %s399_s16, %s568_s17  ;;  %p574_p2 = scmp.lt.s32.totalorder %s568_s17, %s568_s17 }
  0x16   :  { %93 = vperm.xlu1 %567, %v45_v17   ;;  %69 = vperm.xlu0 %566, %v37_v18  }
  0x17   :  { %485 = vmatprep.subr.mxu0 %v174_v19  ;;  %535 = vmatprep.subr.mxu1 %v174_v19  ;;  %p575_p3 = por %p574_p2, %p573_p1 }
  0x18   :  { %486 = vmatpush3.msra.mxu0 %v174_v19  ;;  %551 = vmatpush3.msra.mxu1 %v174_v19 }
  0x19   :  { %487 = vmatprep.subr.mxu0 %v173_v20  ;;  %536 = vmatprep.subr.mxu1 %v173_v20  ;;  %p576_p4 = pnand %p575_p3, %p569_p0 }
  0x1a   :  { %96 = vperm.xlu1 %567, %v46_v21   ;;  %72 = vperm.xlu0 %566, %v38_v22  }
  0x1b   :  { %488 = vmatpush3.msra.mxu0 %v173_v20  ;;  %552 = vmatpush3.msra.mxu1 %v173_v20 }
  0x1c   :  { %489 = vmatprep.subr.mxu0 %v172_v23  ;;  %537 = vmatprep.subr.mxu1 %v172_v23 }
  0x1d   :  { %490 = vmatpush3.msra.mxu0 %v172_v23  ;;  %553 = vmatpush3.msra.mxu1 %v172_v23 }
  0x1e   :  { %99 = vperm.xlu1 %567, %v47_v24   ;;  %75 = vperm.xlu0 %566, %v39_v25  }
  0x1f   :  { %491 = vmatprep.subr.mxu0 %v171_v26  ;;  %538 = vmatprep.subr.mxu1 %v171_v26 }
  0x20   :  { %492 = vmatpush3.msra.mxu0 %v171_v26  ;;  %554 = vmatpush3.msra.mxu1 %v171_v26 }
  0x21   :  { %493 = vmatprep.subr.mxu0 %v170_v27  ;;  %539 = vmatprep.subr.mxu1 %v170_v27 }
  0x22   :  { %494 = vmatpush3.msra.mxu0 %v170_v27  ;;  %555 = vmatpush3.msra.mxu1 %v170_v27 }
  0x23   :  { %495 = vmatprep.subr.mxu0 %v169_v28  ;;  %540 = vmatprep.subr.mxu1 %v169_v28 }
  0x24   :  { %496 = vmatpush3.msra.mxu0 %v169_v28  ;;  %556 = vmatpush3.msra.mxu1 %v169_v28 }
  0x25   :  { %497 = vmatprep.subr.mxu0 %v168_v29  ;;  %541 = vmatprep.subr.mxu1 %v168_v29 }
  0x26   :  { %498 = vmatpush3.msra.mxu0 %v168_v29  ;;  %557 = vmatpush3.msra.mxu1 %v168_v29 }
  0x27   :  { %499 = vmatprep.subr.mxu0 %v167_v30  ;;  %542 = vmatprep.subr.mxu1 %v167_v30 }
  0x28   :  { %500 = vmatpush3.msra.mxu0 %v167_v30  ;;  %558 = vmatpush3.msra.mxu1 %v167_v30 }
  0x29   :  { %501 = vmatprep.subr.mxu0 %v166_v31  ;;  %543 = vmatprep.subr.mxu1 %v166_v31 }
  0x2a   :  { %502 = vmatpush3.msra.mxu0 %v166_v31  ;;  %559 = vmatpush3.msra.mxu1 %v166_v31 }
  0x2b   :  { %503 = vmatprep.subr.mxu0 %v165_v32  ;;  %544 = vmatprep.subr.mxu1 %v165_v32 }
  0x2c   :  { %504 = vmatpush3.msra.mxu0 %v165_v32  ;;  %560 = vmatpush3.msra.mxu1 %v165_v32 }
  0x7d   :  { %v58_v35 = vpop.permute.xlu1 %57  ;;  %v55_v36 = vpop.permute.xlu0 %54 }
  0x7e   :  { %vm102_vm0 = vcmp.eq.s32.totalorder %v50_v34, %v58_v35  ;;  %vm101_vm1 = vcmp.eq.s32.totalorder %v50_v34, %v55_v36 }
  0x7f   :  { %505 = vmatprep.mubr.msk.f32.mxu0 %vm101_vm1, %v591_v37 }
  0x80   :  { %506 = vmatmul.mubr.msk.f32.vlgmr.msra.gmra.mxu0 %vm102_vm0, %v591_v37 }
  0x81   :  { %v82_v38 = vpop.permute.xlu1 %81  ;;  %v79_v39 = vpop.permute.xlu0 %78 }
  0x82   :  { %vm110_vm2 = vcmp.eq.s32.totalorder %v50_v34, %v82_v38  ;;  %vm109_vm3 = vcmp.eq.s32.totalorder %v50_v34, %v79_v39 }
  0x83   :  { %517 = vmatprep.mubr.msk.f32.mxu1 %vm109_vm3, %v591_v37 }
  0x84   :  { %518 = vmatmul.mubr.msk.f32.vlgmr.msra.gmra.mxu1 %vm110_vm2, %v591_v37 }
  0x85   :  { %v85_v40 = vpop.permute.xlu1 %84  ;;  %v61_v41 = vpop.permute.xlu0 %60 }
  0x86   :  { %vm111_vm4 = vcmp.eq.s32.totalorder %v50_v34, %v85_v40  ;;  %vm103_vm5 = vcmp.eq.s32.totalorder %v50_v34, %v61_v41 }
  0x87   :  { %508 = vmatprep.mubr.msk.f32.mxu0 %vm103_vm5, %v591_v37  ;;  %520 = vmatprep.mubr.msk.f32.mxu1 %vm111_vm4, %v591_v37 }
  0x89   :  { %v88_v42 = vpop.permute.xlu1 %87  ;;  %v64_v43 = vpop.permute.xlu0 %63 }
  0x8a   :  { %vm112_vm6 = vcmp.eq.s32.totalorder %v50_v34, %v88_v42  ;;  %vm104_vm7 = vcmp.eq.s32.totalorder %v50_v34, %v64_v43 }
  0x8b   :  { %509 = vmatmul.mubr.msk.f32.gmra.mxu0 %vm104_vm7, %v591_v37  ;;  %521 = vmatmul.mubr.msk.f32.gmra.mxu1 %vm112_vm6, %v591_v37 }
  0x8d   :  { %v91_v44 = vpop.permute.xlu1 %90  ;;  %v67_v45 = vpop.permute.xlu0 %66 }
  0x8e   :  { %vm113_vm8 = vcmp.eq.s32.totalorder %v50_v34, %v91_v44  ;;  %vm105_vm9 = vcmp.eq.s32.totalorder %v50_v34, %v67_v45 }
  0x8f   :  { %511 = vmatprep.mubr.msk.f32.mxu0 %vm105_vm9, %v591_v37  ;;  %523 = vmatprep.mubr.msk.f32.mxu1 %vm113_vm8, %v591_v37 }
  0x91   :  { %v94_v46 = vpop.permute.xlu1 %93  ;;  %v70_v47 = vpop.permute.xlu0 %69 }
  0x92   :  { %vm114_vm10 = vcmp.eq.s32.totalorder %v50_v34, %v94_v46  ;;  %vm106_vm11 = vcmp.eq.s32.totalorder %v50_v34, %v70_v47 }
  0x93   :  { %512 = vmatmul.mubr.msk.f32.gmra.mxu0 %vm106_vm11, %v591_v37  ;;  %524 = vmatmul.mubr.msk.f32.gmra.mxu1 %vm114_vm10, %v591_v37 }
  0x95   :  { %v97_v48 = vpop.permute.xlu1 %96  ;;  %v73_v49 = vpop.permute.xlu0 %72 }
  0x96   :  { %vm115_vm12 = vcmp.eq.s32.totalorder %v50_v34, %v97_v48  ;;  %vm107_vm13 = vcmp.eq.s32.totalorder %v50_v34, %v73_v49 }
  0x97   :  { %514 = vmatprep.mubr.msk.f32.mxu0 %vm107_vm13, %v591_v37  ;;  %526 = vmatprep.mubr.msk.f32.mxu1 %vm115_vm12, %v591_v37 }
  0x99   :  { %v100_v50 = vpop.permute.xlu1 %99  ;;  %v76_v51 = vpop.permute.xlu0 %75 }
  0x9a   :  { %vm116_vm14 = vcmp.eq.s32.totalorder %v50_v34, %v100_v50  ;;  %vm108_vm15 = vcmp.eq.s32.totalorder %v50_v34, %v76_v51 }
  0x9b   :  { %515 = vmatmul.mubr.msk.f32.gmra.mxu0 %vm108_vm15, %v591_v37  ;;  %527 = vmatmul.mubr.msk.f32.gmra.mxu1 %vm116_vm14, %v591_v37 }
 0x140   :  { %v507_v52 = vpop.f32.mrf.mxu0 }
 0x141   :  { %378 = vst [vmem:[#allocation3 + $0x8] sm:$0xff] %v507_v52 }
 0x142   :  { %v247_v53 = vpop.f32.mrf.mxu0 }
 0x143   :  { %377 = vst [vmem:[#allocation3] sm:$0xff] %v247_v53 }
 0x144   :  { %v519_v54 = vpop.f32.mrf.mxu1 }
 0x145   :  { %386 = vst [vmem:[#allocation3 + $0x48] sm:$0xff] %v519_v54 }
 0x146   :  { %v287_v55 = vpop.f32.mrf.mxu1 }
 0x147   :  { %385 = vst [vmem:[#allocation3 + $0x40] sm:$0xff] %v287_v55 }
 0x14b   :  { %v510_v56 = vpop.f32.mrf.mxu0  ;;  %v522_v57 = vpop.f32.mrf.mxu1 }
 0x14c   :  { %380 = vst [vmem:[#allocation3 + $0x18] sm:$0xff] %v510_v56  ;;  %388 = vst [vmem:[#allocation3 + $0x58] sm:$0xff] %v522_v57 }
 0x14d   :  { %v257_v58 = vpop.f32.mrf.mxu0  ;;  %v297_v59 = vpop.f32.mrf.mxu1 }
 0x14e   :  { %379 = vst [vmem:[#allocation3 + $0x10] sm:$0xff] %v257_v58  ;;  %387 = vst [vmem:[#allocation3 + $0x50] sm:$0xff] %v297_v59 }
 0x153   :  { %v513_v60 = vpop.f32.mrf.mxu0  ;;  %v525_v61 = vpop.f32.mrf.mxu1 }
 0x154   :  { %382 = vst [vmem:[#allocation3 + $0x28] sm:$0xff] %v513_v60  ;;  %390 = vst [vmem:[#allocation3 + $0x68] sm:$0xff] %v525_v61 }
 0x155   :  { %v267_v62 = vpop.f32.mrf.mxu0  ;;  %v307_v63 = vpop.f32.mrf.mxu1 }
 0x156   :  { %381 = vst [vmem:[#allocation3 + $0x20] sm:$0xff] %v267_v62  ;;  %389 = vst [vmem:[#allocation3 + $0x60] sm:$0xff] %v307_v63 }
 0x15b   :  { %v516_v0 = vpop.f32.mrf.mxu0  ;;  %v528_v1 = vpop.f32.mrf.mxu1 }
 0x15c   :  { %384 = vst [vmem:[#allocation3 + $0x38] sm:$0xff] %v516_v0  ;;  %392 = vst [vmem:[#allocation3 + $0x78] sm:$0xff] %v528_v1 }
 0x15d   :  { %v277_v2 = vpop.f32.mrf.mxu0  ;;  %v317_v3 = vpop.f32.mrf.mxu1 }
 0x15e   :  { %383 = vst [vmem:[#allocation3 + $0x30] sm:$0xff] %v277_v2  ;;  %391 = vst [vmem:[#allocation3 + $0x70] sm:$0xff] %v317_v3 }
 0x15f   :  { %579 = shalt.err (!%p576_p4)
}
 0x160   :  { %s593_s18 = smov 128   ;;  %s594_s19 = smov 8  }
 0x161   :  { %404 = dma.vmem_to_hbm [thread:$0]  %s399_s16, 2048, %s711_s2, [#allocation4], %s593_s18, %s593_s18, %s594_s19  }
 0x162   :  { %588 = dma.done.wait [#allocation4], 2048  }
 0x163   :  { %589 = vsyncadd [#allocation4], 4294965248 }
 0x164   :  { %408 = vsyncpa [#allocation4], 1 }

</bundles_post_ra>
